<compile_context>
chip_gen: v7x
topology: tpu7x:2x2x1
jax: 0.10.0
libtpu: 0.0.40
codegen_flags: <defaults>
</compile_context>

<pallas_src>
import jax
import jax.numpy as jnp
from jax import lax
from jax.experimental import pallas as pl
from jax.experimental.pallas import tpu as pltpu


_SUBLANE = 8  # keep the paired-column axis a multiple of 8 so in-kernel reshapes are free


def _round_up(x, m):
    return (x + m - 1) // m * m


def _pick_row_tile(ho, wp, ci, co, itemsize, budget_bytes=4 << 20):
    """Largest divisor of `ho` whose per-tile (input + output) footprint fits the budget."""
    per_row = (2 * wp * 2 * ci + wp * co) * itemsize  # 2 input parity rows + 1 output row
    th = max(1, min(ho, budget_bytes // max(per_row, 1)))
    while ho % th:
        th -= 1
    return th


def _down_conv_kernel(xm_ref, xh_ref, w01_ref, w2_ref, b_ref, o_ref):
    """3x3 stride-2 conv on the parity-grouped, zero-padded input.

    xm_ref : (1, TH, 2, Wp, 2*Ci)  padded rows [2*r0, 2*r0+2*TH), grouped as
                                   (row parity a, paired col j, [even col | odd col] x Ci)
    xh_ref : (1, 1, 1, Wp, 2*Ci)   halo: padded even row 2*(r0+TH)
    w01_ref: (3, 2*Ci, Co)         per kh, K-stacked taps [kw=0 ; kw=1]
    w2_ref : (3, Ci, Co)           per kh, tap kw=2
    b_ref  : (1, Co)               bias (f32)
    o_ref  : (1, TH, Wo, Co)
    """
    _, TH, _, Wp, two_ci = xm_ref.shape
    ci = two_ci // 2
    _, _, Wo, co = o_ref.shape
    M = TH * Wp
    cd = w01_ref.dtype  # MXU operand dtype (bf16 when mxu_dtype=bf16; else input dtype)

    row0 = xm_ref[0, :, 0, :, :]            # x_pad[2*(r0+t)]     (TH, Wp, 2*Ci)
    row1 = xm_ref[0, :, 1, :, :]            # x_pad[2*(r0+t)+1]
    halo = xh_ref[0, :, 0, :, :]            # x_pad[2*(r0+TH)]    (1, Wp, 2*Ci)
    if TH > 1:
        row2 = jnp.concatenate([row0[1:], halo], axis=0)   # x_pad[2*(r0+t)+2]
    else:
        row2 = halo

    zcol = jnp.zeros((TH, 1, ci), dtype=row0.dtype)
    acc = jnp.zeros((M, co), dtype=jnp.float32)
    for kh, s in enumerate((row0, row1, row2)):
        # taps (kh, 0) and (kh, 1): one K = 2*Ci matmul on the MXU.
        acc += jnp.dot(s.reshape(M, two_ci).astype(cd), w01_ref[kh],
                       preferred_element_type=jnp.float32)
        # tap (kh, 2): even-column data shifted by one paired column (zero past the pad).
        s_shift = jnp.concatenate([s[:, 1:, :ci], zcol], axis=1)       # (TH, Wp, Ci)
        acc += jnp.dot(s_shift.reshape(M, ci).astype(cd), w2_ref[kh],
                       preferred_element_type=jnp.float32)

    acc = acc + b_ref[...]                       # (1, Co) broadcast
    y = acc.reshape(TH, Wp, co)
    o_ref[0] = y[:, :Wo, :].astype(o_ref.dtype)  # drop padded columns; lane-dense store


def _avg_pool_kernel(x_ref, o_ref):
    """2x2 / stride-2 average pool on the parity-grouped input.

    x_ref: (1, TH, 2, Wo, 2*C);  o_ref: (1, TH, Wo, C)
    """
    c = o_ref.shape[-1]
    s = x_ref[0, :, 0, :, :] + x_ref[0, :, 1, :, :]                 # (TH, Wo, 2*C)
    o_ref[0] = ((s[:, :, :c] + s[:, :, c:]) * 0.25).astype(o_ref.dtype)


def downsample_forward_nhwc(x_nhwc, weight=None, bias=None, with_conv=True,
                            mxu_dtype=None):
    """Downsample.forward on NHWC input.  x: (B, H, W, C), H and W even.

    weight: (C_out, C_in, 3, 3) in PyTorch Conv2d layout; bias: (C_out,).
    Returns (B, H//2, W//2, C_out) NHWC.
    """
    B, H, W, Ci = x_nhwc.shape
    assert H % 2 == 0 and W % 2 == 0, "Downsample kernel assumes even spatial dims"
    Ho, Wo = H // 2, W // 2
    dt = x_nhwc.dtype
    itemsize = jnp.dtype(dt).itemsize
    vmem_limit = 48 * 1024 * 1024  # fits v7x (64 MiB physical) with headroom

    if not with_conv:
        xg = x_nhwc.reshape(B, Ho, 2, Wo, 2 * Ci)          # free (contiguous) reshape
        TH = _pick_row_tile(Ho, Wo, Ci, Ci, itemsize)
        n_rt = Ho // TH
        return pl.pallas_call(
            _avg_pool_kernel,
            out_shape=jax.ShapeDtypeStruct((B, Ho, Wo, Ci), dt),
            grid_spec=pltpu.PrefetchScalarGridSpec(
                num_scalar_prefetch=0,
                grid=(B, n_rt),
                in_specs=[
                    pl.BlockSpec((1, TH, 2, Wo, 2 * Ci), lambda b, i: (b, i, 0, 0, 0)),
                ],
                out_specs=pl.BlockSpec((1, TH, Wo, Ci), lambda b, i: (b, i, 0, 0)),
            ),
            compiler_params=pltpu.CompilerParams(
                dimension_semantics=("parallel", "parallel"),
                vmem_limit_bytes=vmem_limit,
            ),
        )(xg)

    assert weight is not None and bias is not None
    Co = weight.shape[0]
    assert weight.shape == (Co, Ci, 3, 3), weight.shape
    mxu_dtype = dt if mxu_dtype is None else mxu_dtype

    # Input prep: torch pad (bottom/right +1, zeros) plus alignment padding, then the
    # free parity-grouping reshape (B, H+2, Wpad, Ci) -> (B, Ho+1, 2, Wp, 2*Ci).
    Wp = _round_up(Wo + 1, _SUBLANE)
    pw = 2 * Wp - W
    xp = jnp.pad(x_nhwc, ((0, 0), (0, 2), (0, pw), (0, 0))).astype(mxu_dtype)
    xg = xp.reshape(B, Ho + 1, 2, Wp, 2 * Ci)

    # Weight prep: (Co, Ci, 3, 3) -> (kh, kw, Ci, Co); K-stack kw=0 and kw=1.
    w_t = jnp.transpose(weight, (2, 3, 1, 0)).astype(mxu_dtype)     # (3, 3, Ci, Co)
    w01 = jnp.concatenate([w_t[:, 0], w_t[:, 1]], axis=1)           # (3, 2*Ci, Co)
    w2 = w_t[:, 2]                                                  # (3, Ci, Co)
    b_k = bias.astype(jnp.float32).reshape(1, Co)

    TH = _pick_row_tile(Ho, Wp, Ci, Co, jnp.dtype(mxu_dtype).itemsize)
    n_rt = Ho // TH

    return pl.pallas_call(
        _down_conv_kernel,
        out_shape=jax.ShapeDtypeStruct((B, Ho, Wo, Co), dt),
        grid_spec=pltpu.PrefetchScalarGridSpec(
            num_scalar_prefetch=0,
            grid=(B, n_rt),
            in_specs=[
                pl.BlockSpec((1, TH, 2, Wp, 2 * Ci),
                             lambda b, i: (b, i, 0, 0, 0)),
                # one-row halo (even parity only) at output-row i*TH + TH
                pl.BlockSpec((1, 1, 1, Wp, 2 * Ci),
                             lambda b, i: (b, i * TH + TH, 0, 0, 0)),
                pl.BlockSpec((3, 2 * Ci, Co), lambda b, i: (0, 0, 0)),
                pl.BlockSpec((3, Ci, Co), lambda b, i: (0, 0, 0)),
                pl.BlockSpec((1, Co), lambda b, i: (0, 0)),
            ],
            out_specs=pl.BlockSpec((1, TH, Wo, Co), lambda b, i: (b, i, 0, 0)),
        ),
        compiler_params=pltpu.CompilerParams(
            dimension_semantics=("parallel", "parallel"),
            vmem_limit_bytes=vmem_limit,
        ),
    )(xg, xg, w01, w2, b_k)


def downsample_forward(x_nchw, weight=None, bias=None, with_conv=True, mxu_dtype=None):
    """Equivalent of Downsample.forward for NCHW input; returns NCHW.

    If the surrounding model already runs NHWC, call `downsample_forward_nhwc` directly
    and skip both relayout transposes (they are pure HBM traffic for a mem-bound op).
    """
    x_nhwc = jnp.transpose(x_nchw, (0, 2, 3, 1))
    out_nhwc = downsample_forward_nhwc(x_nhwc, weight, bias, with_conv, mxu_dtype)
    return jnp.transpose(out_nhwc, (0, 3, 1, 2))


def _reference(x_nchw, weight, bias, with_conv):
    """Pure-JAX reference matching the torch module."""
    if with_conv:
        xp = jnp.pad(x_nchw, ((0, 0), (0, 0), (0, 1), (0, 1)))
        out = lax.conv_general_dilated(
            xp, weight, window_strides=(2, 2), padding="VALID",
            dimension_numbers=("NCHW", "OIHW", "NCHW"))
        return out + bias[None, :, None, None]
    summed = lax.reduce_window(x_nchw, 0.0, lax.add,
                               window_dimensions=(1, 1, 2, 2),
                               window_strides=(1, 1, 2, 2), padding="VALID")
    return summed * 0.25


if __name__ == "__main__":
    B, C, H, W = 2, 4, 16, 16
    key = jax.random.PRNGKey(0)
    kx, kw, kb = jax.random.split(key, 3)

    x = jax.random.normal(kx, (B, C, H, W), dtype=jnp.float32)
    # Deterministic synthetic Conv2d(C, C, 3, stride=2, padding=0) parameters.
    weight = jax.random.normal(kw, (C, C, 3, 3), dtype=jnp.float32) * 0.1
    bias = jax.random.normal(kb, (C,), dtype=jnp.float32) * 0.1

    # with_conv=True path.
    out = jax.block_until_ready(downsample_forward(x, weight, bias, with_conv=True))
    ref = _reference(x, weight, bias, with_conv=True)
    assert out.shape == (B, C, H // 2, W // 2), out.shape
    assert jnp.allclose(out, ref, atol=1e-4, rtol=1e-4), "conv downsample mismatch"

    # with_conv=False (avg_pool2d) path.
    out_pool = jax.block_until_ready(downsample_forward(x, with_conv=False))
    ref_pool = _reference(x, weight, bias, with_conv=False)
    assert out_pool.shape == (B, C, H // 2, W // 2), out_pool.shape
    assert jnp.allclose(out_pool, ref_pool, atol=1e-5, rtol=1e-5), "avg-pool mismatch"

    print("KERNEL_OK")
</pallas_src>

<mosaic_0001>
module attributes {stable_mosaic.version = 11 : i64} {
  func.func @_down_conv_kernel(%arg0: i32, %arg1: i32, %arg2: memref<1x8x2x16x8xf32, #tpu.memory_space<vmem>>, %arg3: memref<1x1x1x16x8xf32, #tpu.memory_space<vmem>>, %arg4: memref<3x8x4xf32, #tpu.memory_space<vmem>>, %arg5: memref<3x4x4xf32, #tpu.memory_space<vmem>>, %arg6: memref<1x4xf32, #tpu.memory_space<vmem>>, %arg7: memref<1x8x8x4xf32, #tpu.memory_space<vmem>>) attributes {dimension_semantics = [#tpu.dimension_semantics<parallel>, #tpu.dimension_semantics<parallel>], iteration_bounds = array<i64: 2, 1>, scalar_prefetch = 0 : i64, scratch_operands = 0 : i64, tpu.core_type = #tpu.core_type<tc>, window_params = [{transform_indices = @transform_0, window_bounds = array<i64: 1, 8, 2, 16, 8>}, {transform_indices = @transform_1, window_bounds = array<i64: 1, 1, 1, 16, 8>}, {pipeline_mode = #tpu.pipeline_mode<synchronous>, transform_indices = @transform_2, window_bounds = array<i64: 3, 8, 4>}, {pipeline_mode = #tpu.pipeline_mode<synchronous>, transform_indices = @transform_3, window_bounds = array<i64: 3, 4, 4>}, {pipeline_mode = #tpu.pipeline_mode<synchronous>, transform_indices = @transform_4, window_bounds = array<i64: 1, 4>}, {transform_indices = @transform_5, window_bounds = array<i64: 1, 8, 8, 4>}]} {
    %c0 = arith.constant 0 : index
    %c0_0 = arith.constant 0 : index
    %c0_1 = arith.constant 0 : index
    %c0_2 = arith.constant 0 : index
    %c0_3 = arith.constant 0 : index
    %0 = vector.load %arg2[%c0, %c0_0, %c0_1, %c0_2, %c0_3] : memref<1x8x2x16x8xf32, #tpu.memory_space<vmem>>, vector<1x8x1x16x8xf32>
    %1 = vector.shape_cast %0 : vector<1x8x1x16x8xf32> to vector<8x16x8xf32>
    %c0_4 = arith.constant 0 : index
    %c0_5 = arith.constant 0 : index
    %c1 = arith.constant 1 : index
    %c0_6 = arith.constant 0 : index
    %c0_7 = arith.constant 0 : index
    %2 = vector.load %arg2[%c0_4, %c0_5, %c1, %c0_6, %c0_7] : memref<1x8x2x16x8xf32, #tpu.memory_space<vmem>>, vector<1x8x1x16x8xf32>
    %3 = vector.shape_cast %2 : vector<1x8x1x16x8xf32> to vector<8x16x8xf32>
    %c0_8 = arith.constant 0 : index
    %c0_9 = arith.constant 0 : index
    %c0_10 = arith.constant 0 : index
    %c0_11 = arith.constant 0 : index
    %c0_12 = arith.constant 0 : index
    %4 = vector.load %arg3[%c0_8, %c0_9, %c0_10, %c0_11, %c0_12] : memref<1x1x1x16x8xf32, #tpu.memory_space<vmem>>, vector<1x1x1x16x8xf32>
    %5 = vector.shape_cast %4 : vector<1x1x1x16x8xf32> to vector<1x16x8xf32>
    %6 = vector.extract_strided_slice %1 {offsets = [1, 0, 0], sizes = [7, 16, 8], strides = [1, 1, 1]} : vector<8x16x8xf32> to vector<7x16x8xf32>
    %7 = tpu.concatenate %6, %5 in 0 : vector<7x16x8xf32>, vector<1x16x8xf32> -> vector<8x16x8xf32>
    %cst = arith.constant 0.000000e+00 : f32
    %8 = vector.broadcast %cst : f32 to vector<8x1x4xf32>
    %cst_13 = arith.constant 0.000000e+00 : f32
    %9 = vector.broadcast %cst_13 : f32 to vector<128x4xf32>
    %10 = vector.shape_cast %1 : vector<8x16x8xf32> to vector<128x8xf32>
    %c0_14 = arith.constant 0 : index
    %c0_15 = arith.constant 0 : index
    %c0_16 = arith.constant 0 : index
    %11 = vector.load %arg4[%c0_14, %c0_15, %c0_16] : memref<3x8x4xf32, #tpu.memory_space<vmem>>, vector<1x8x4xf32>
    %12 = vector.shape_cast %11 : vector<1x8x4xf32> to vector<8x4xf32>
    %cst_17 = arith.constant dense<0.000000e+00> : vector<128x4xf32>
    %13 = tpu.matmul %10, %12, %cst_17 {dimension_numbers = #tpu.dot_dimension_numbers<[1], [0], [0], [1], [0, 0, 1, 1], [], []>} : vector<128x8xf32>, vector<8x4xf32>, vector<128x4xf32> -> vector<128x4xf32>
    %14 = arith.addf %9, %13 : vector<128x4xf32>
    %15 = vector.extract_strided_slice %1 {offsets = [0, 1, 0], sizes = [8, 15, 4], strides = [1, 1, 1]} : vector<8x16x8xf32> to vector<8x15x4xf32>
    %16 = tpu.concatenate %15, %8 in 1 : vector<8x15x4xf32>, vector<8x1x4xf32> -> vector<8x16x4xf32>
    %17 = vector.shape_cast %16 : vector<8x16x4xf32> to vector<128x4xf32>
    %c0_18 = arith.constant 0 : index
    %c0_19 = arith.constant 0 : index
    %c0_20 = arith.constant 0 : index
    %18 = vector.load %arg5[%c0_18, %c0_19, %c0_20] : memref<3x4x4xf32, #tpu.memory_space<vmem>>, vector<1x4x4xf32>
    %19 = vector.shape_cast %18 : vector<1x4x4xf32> to vector<4x4xf32>
    %cst_21 = arith.constant dense<0.000000e+00> : vector<128x4xf32>
    %20 = tpu.matmul %17, %19, %cst_21 {dimension_numbers = #tpu.dot_dimension_numbers<[1], [0], [0], [1], [0, 0, 1, 1], [], []>} : vector<128x4xf32>, vector<4x4xf32>, vector<128x4xf32> -> vector<128x4xf32>
    %21 = arith.addf %14, %20 : vector<128x4xf32>
    %22 = vector.shape_cast %3 : vector<8x16x8xf32> to vector<128x8xf32>
    %c1_22 = arith.constant 1 : index
    %c0_23 = arith.constant 0 : index
    %c0_24 = arith.constant 0 : index
    %23 = vector.load %arg4[%c1_22, %c0_23, %c0_24] : memref<3x8x4xf32, #tpu.memory_space<vmem>>, vector<1x8x4xf32>
    %24 = vector.shape_cast %23 : vector<1x8x4xf32> to vector<8x4xf32>
    %cst_25 = arith.constant dense<0.000000e+00> : vector<128x4xf32>
    %25 = tpu.matmul %22, %24, %cst_25 {dimension_numbers = #tpu.dot_dimension_numbers<[1], [0], [0], [1], [0, 0, 1, 1], [], []>} : vector<128x8xf32>, vector<8x4xf32>, vector<128x4xf32> -> vector<128x4xf32>
    %26 = arith.addf %21, %25 : vector<128x4xf32>
    %27 = vector.extract_strided_slice %3 {offsets = [0, 1, 0], sizes = [8, 15, 4], strides = [1, 1, 1]} : vector<8x16x8xf32> to vector<8x15x4xf32>
    %28 = tpu.concatenate %27, %8 in 1 : vector<8x15x4xf32>, vector<8x1x4xf32> -> vector<8x16x4xf32>
    %29 = vector.shape_cast %28 : vector<8x16x4xf32> to vector<128x4xf32>
    %c1_26 = arith.constant 1 : index
    %c0_27 = arith.constant 0 : index
    %c0_28 = arith.constant 0 : index
    %30 = vector.load %arg5[%c1_26, %c0_27, %c0_28] : memref<3x4x4xf32, #tpu.memory_space<vmem>>, vector<1x4x4xf32>
    %31 = vector.shape_cast %30 : vector<1x4x4xf32> to vector<4x4xf32>
    %cst_29 = arith.constant dense<0.000000e+00> : vector<128x4xf32>
    %32 = tpu.matmul %29, %31, %cst_29 {dimension_numbers = #tpu.dot_dimension_numbers<[1], [0], [0], [1], [0, 0, 1, 1], [], []>} : vector<128x4xf32>, vector<4x4xf32>, vector<128x4xf32> -> vector<128x4xf32>
    %33 = arith.addf %26, %32 : vector<128x4xf32>
    %34 = vector.shape_cast %7 : vector<8x16x8xf32> to vector<128x8xf32>
    %c2 = arith.constant 2 : index
    %c0_30 = arith.constant 0 : index
    %c0_31 = arith.constant 0 : index
    %35 = vector.load %arg4[%c2, %c0_30, %c0_31] : memref<3x8x4xf32, #tpu.memory_space<vmem>>, vector<1x8x4xf32>
    %36 = vector.shape_cast %35 : vector<1x8x4xf32> to vector<8x4xf32>
    %cst_32 = arith.constant dense<0.000000e+00> : vector<128x4xf32>
    %37 = tpu.matmul %34, %36, %cst_32 {dimension_numbers = #tpu.dot_dimension_numbers<[1], [0], [0], [1], [0, 0, 1, 1], [], []>} : vector<128x8xf32>, vector<8x4xf32>, vector<128x4xf32> -> vector<128x4xf32>
    %38 = arith.addf %33, %37 : vector<128x4xf32>
    %39 = vector.extract_strided_slice %7 {offsets = [0, 1, 0], sizes = [8, 15, 4], strides = [1, 1, 1]} : vector<8x16x8xf32> to vector<8x15x4xf32>
    %40 = tpu.concatenate %39, %8 in 1 : vector<8x15x4xf32>, vector<8x1x4xf32> -> vector<8x16x4xf32>
    %41 = vector.shape_cast %40 : vector<8x16x4xf32> to vector<128x4xf32>
    %c2_33 = arith.constant 2 : index
    %c0_34 = arith.constant 0 : index
    %c0_35 = arith.constant 0 : index
    %42 = vector.load %arg5[%c2_33, %c0_34, %c0_35] : memref<3x4x4xf32, #tpu.memory_space<vmem>>, vector<1x4x4xf32>
    %43 = vector.shape_cast %42 : vector<1x4x4xf32> to vector<4x4xf32>
    %cst_36 = arith.constant dense<0.000000e+00> : vector<128x4xf32>
    %44 = tpu.matmul %41, %43, %cst_36 {dimension_numbers = #tpu.dot_dimension_numbers<[1], [0], [0], [1], [0, 0, 1, 1], [], []>} : vector<128x4xf32>, vector<4x4xf32>, vector<128x4xf32> -> vector<128x4xf32>
    %45 = arith.addf %38, %44 : vector<128x4xf32>
    %c0_37 = arith.constant 0 : index
    %c0_38 = arith.constant 0 : index
    %46 = vector.load %arg6[%c0_37, %c0_38] : memref<1x4xf32, #tpu.memory_space<vmem>>, vector<1x4xf32>
    %47 = vector.broadcast %46 : vector<1x4xf32> to vector<128x4xf32>
    %48 = arith.addf %45, %47 : vector<128x4xf32>
    %49 = vector.shape_cast %48 : vector<128x4xf32> to vector<8x16x4xf32>
    %50 = vector.extract_strided_slice %49 {offsets = [0, 0, 0], sizes = [8, 8, 4], strides = [1, 1, 1]} : vector<8x16x4xf32> to vector<8x8x4xf32>
    %c0_39 = arith.constant 0 : index
    %c0_40 = arith.constant 0 : index
    %c0_41 = arith.constant 0 : index
    %c0_42 = arith.constant 0 : index
    %51 = vector.load %arg7[%c0_39, %c0_40, %c0_41, %c0_42] : memref<1x8x8x4xf32, #tpu.memory_space<vmem>>, vector<1x8x8x4xf32>
    %52 = vector.shape_cast %51 : vector<1x8x8x4xf32> to vector<8x8x4xf32>
    %53 = vector.shape_cast %50 : vector<8x8x4xf32> to vector<1x8x8x4xf32>
    tpu.vector_store %arg7[%c0_39, %c0_40, %c0_41, %c0_42], %53 {strides = array<i32>} : memref<1x8x8x4xf32, #tpu.memory_space<vmem>>, vector<1x8x8x4xf32>,
    return
  }
  func.func @transform_0(%arg0: i32, %arg1: i32) -> (i32, i32, i32, i32, i32) {
    %c0_i32 = arith.constant 0 : i32
    %c0_i32_0 = arith.constant 0 : i32
    %c0_i32_1 = arith.constant 0 : i32
    %c0_i32_2 = arith.constant 0 : i32
    return %arg0, %arg1, %c0_i32, %c0_i32_0, %c0_i32_1 : i32, i32, i32, i32, i32
  }
  func.func @transform_1(%arg0: i32, %arg1: i32) -> (i32, i32, i32, i32, i32) {
    %c8_i32 = arith.constant 8 : i32
    %0 = arith.muli %arg1, %c8_i32 : i32
    %c8_i32_0 = arith.constant 8 : i32
    %1 = arith.addi %0, %c8_i32_0 : i32
    %c0_i32 = arith.constant 0 : i32
    %c0_i32_1 = arith.constant 0 : i32
    %c0_i32_2 = arith.constant 0 : i32
    %c0_i32_3 = arith.constant 0 : i32
    return %arg0, %1, %c0_i32, %c0_i32_1, %c0_i32_2 : i32, i32, i32, i32, i32
  }
  func.func @transform_2(%arg0: i32, %arg1: i32) -> (i32, i32, i32) {
    %c0_i32 = arith.constant 0 : i32
    %c0_i32_0 = arith.constant 0 : i32
    %c0_i32_1 = arith.constant 0 : i32
    %c0_i32_2 = arith.constant 0 : i32
    return %c0_i32, %c0_i32_0, %c0_i32_1 : i32, i32, i32
  }
  func.func @transform_3(%arg0: i32, %arg1: i32) -> (i32, i32, i32) {
    %c0_i32 = arith.constant 0 : i32
    %c0_i32_0 = arith.constant 0 : i32
    %c0_i32_1 = arith.constant 0 : i32
    %c0_i32_2 = arith.constant 0 : i32
    return %c0_i32, %c0_i32_0, %c0_i32_1 : i32, i32, i32
  }
  func.func @transform_4(%arg0: i32, %arg1: i32) -> (i32, i32) {
    %c0_i32 = arith.constant 0 : i32
    %c0_i32_0 = arith.constant 0 : i32
    %c0_i32_1 = arith.constant 0 : i32
    return %c0_i32, %c0_i32_0 : i32, i32
  }
  func.func @transform_5(%arg0: i32, %arg1: i32) -> (i32, i32, i32, i32) {
    %c0_i32 = arith.constant 0 : i32
    %c0_i32_0 = arith.constant 0 : i32
    %c0_i32_1 = arith.constant 0 : i32
    return %arg0, %arg1, %c0_i32, %c0_i32_0 : i32, i32, i32, i32
  }
}

</mosaic_0001>

<bundles_post_ra>
// kernel: tpu_custom_call.1
= control target key start
LH: loop header
LB: loop body
LE: loop exit
PB: predicated region body
PF: predicated region fallthrough
CT: control target
= control target key end

     0   :  { %s2136_s18 = smov 0   ;;  %s2138_s19 = smov 0   ;;  %s2537_s0 = inlined_call_operand.vmem [shape: f32[2,9,2,16,8], index: 0, kind: input, shape index: {}]   ;;  %s2538_s1 = inlined_call_operand.vmem [shape: f32[2,9,2,16,8], index: 1, kind: input, shape index: {}]   ;;  %s2539_s2 = inlined_call_operand.vmem [shape: f32[3,8,4], index: 2, kind: input, shape index: {}]   ;;  %s2540_s3 = inlined_call_operand.vmem [shape: f32[3,4,4], index: 3, kind: input, shape index: {}]   ;;  %s2541_s4 = inlined_call_operand.vmem [shape: f32[1,4], index: 4, kind: input, shape index: {}]   ;;  %s2542_s5 = inlined_call_operand.vmem [shape: f32[2,8,8,4], index: 5, kind: output, shape index: {}]  }
   0x1   :  { %s2140_s20 = smov 0  }
   0x2 LB: > { %s27_s21 = sadd.s32 1, %s2100_s19  ;;  %p1667_p0 = scmp.ge.s32.totalorder %s2104_s20, 1  ;;  %s2104_s20 = sphi %s2140_s20, %s15_s20   ;;  %s2100_s19 = sphi %s2138_s19, %s2544_s19   ;;  %s2096_s18 = sphi %s2136_s18, %s2543_s18  }
   0x3   : > { %p29_p1 = scmp.ge.s32.totalorder %s27_s21, 2  ;;  %p245_p2 = scmp.lt.s32.totalorder %s2104_s20, 3 }
   0x5   : > { %s2546_s21 = smov (%p29_p1, %s27_s21), 0  ;;  %p246_p3 = pnand %p1667_p0, %p245_p2 }
   0x6   : > { %v438_v0 = vld [vmem:[%s2540_s3] sm:$0xf] (!%p246_p3)  ;;  %vm480_vm0 = vcmask (!%p246_p3), 1043456   ;;  %p306_p4 = scmp.lt.s32.totalorder (!%p246_p3), %s2096_s18, 1  ;;  %v1721_v2 = vld [vmem:[%s2539_s2 + $0x8] sm:$0xff] (!%p246_p3)  ;;  %vm621_vm1 = vcmask (!%p246_p3), 64512  }
   0x7   : > { %249 = sbr.rel (%p246_p3) target bundleno = 335 (0x14f), region = 40  ;;  %v380_v1 = vld [vmem:[%s2539_s2] sm:$0xff] (!%p246_p3)  ;;  %1899 = vmatprep.subr.msk.mxu0 (!%p246_p3), %vm480_vm0, %v438_v0  ;;  %v2182_v4 = vld [vmem:[%s2540_s3 + $0x8] sm:$0xf] (!%p246_p3)  ;;  %vm397_vm2 = vcmask (!%p246_p3), 1046528   ;;  %vm439_vm3 = vcmask (!%p246_p3), 31744  }
   0x8   : > { %1925 = vmatprep.subr.mxu1 (!%p246_p3), %v380_v1  ;;  %v1738_v3 = vld [vmem:[%s2540_s3 + $0x4] sm:$0xf] (!%p246_p3)  ;;  %1900 = vmatpush3.msk.msra.mxu0 (!%p246_p3), %vm480_vm0, %v438_v0  ;;  %v2222_v22 = vld [vmem:[%s2539_s2 + $0x10] sm:$0xff] (!%p246_p3) }
   0x9   : > { %1926 = vmatpush3.msra.mxu1 (!%p246_p3), %v380_v1  ;;  %1951 = vmatprep.subr.mxu0 (!%p246_p3), %v1721_v2 }
   0xa   : > { %1977 = vmatprep.subr.msk.mxu1 (!%p246_p3), %vm480_vm0, %v1738_v3 }
   0xe   : > { %s2548_s18 = smov (!%p306_p4, %s2096_s18), 1 }
   0xf   : > { %s2055_s30 = smul.u32 288, %s2548_s18  ;;  %s1796_s17 = sshll.u32 %s2548_s18, 6 }
  0x10   : > { %s2510_s26 = scalar_lea.vmem %s2542_s5, %s1796_s17 }
  0x11   : > { %s2177_s8 = scalar_lea.vmem %s2537_s0, %s2055_s30  ;;  %s1795_s13 = sadd.s32 256, %s2055_s30 }
  0x12   : > { %v345_v5 = vld [vmem:[%s2177_s8] sm:$0xff]  ;;  %v346_v6 = vld [vmem:[%s2177_s8 + $0x8] sm:$0xff]  ;;  %s332_s16 = scalar_lea.vmem %s2538_s1, %s1795_s13  ;;  %v1672_v54 = vld [vmem:[%s2177_s8 + $0x10] sm:$0xff] }
  0x13   : > { %v2187_v7 = vld [vmem:[%s2177_s8 + $0x20] sm:$0xff]  ;;  %v398_v8 = vrot.slane %v345_v5, 1  ;;  %v399_v9 = vrot.slane %v346_v6, 1  ;;  %1927 = vmatprep.mubr.msk.f32.mxu1 %vm621_vm1, %v345_v5  ;;  %v2191_v10 = vld [vmem:[%s2177_s8 + $0x28] sm:$0xff]  ;;  %v1673_v55 = vld [vmem:[%s2177_s8 + $0x18] sm:$0xff]  ;;  %v986_v59 = vrot.slane %v1672_v54, 1 }
  0x14   : > { %v401_v11 = vrot.slane %v2187_v7, 1  ;;  %v2195_v12 = vld [vmem:[%s2177_s8 + $0x40] sm:$0xff]  ;;  %v2198_v13 = vld [vmem:[%s2177_s8 + $0x48] sm:$0xff]  ;;  %1928 = vmatmul.mubr.msk.f32.vlgmr.msra.gmra.mrb[0].mxu1 %vm621_vm1, %v346_v6  ;;  %v402_v14 = vrot.slane %v2191_v10, 1  ;;  %v987_v60 = vrot.slane %v1673_v55, 1  ;;  %v1674_v62 = vld [vmem:[%s2177_s8 + $0x30] sm:$0xff] }
  0x15   : > { %v400_v15 = vsel %vm397_vm2, %v398_v8, %v399_v9  ;;  %v430_v16 = vsel %vm397_vm2, %v399_v9, 0.0  ;;  %1978 = vmatpush3.msk.msra.mxu1 %vm480_vm0, %v1738_v3  ;;  %1930 = vmatprep.mubr.msk.f32.mxu1 %vm621_vm1, %v2187_v7  ;;  %v404_v17 = vrot.slane %v2195_v12, 1  ;;  %v405_v18 = vrot.slane %v2198_v13, 1  ;;  %v2214_v20 = vld [vmem:[%s2177_s8 + $0x60] sm:$0xff]  ;;  %v2217_v21 = vld [vmem:[%s2177_s8 + $0x68] sm:$0xff]  ;;  %v1675_v63 = vld [vmem:[%s2177_s8 + $0x38] sm:$0xff] }
  0x16   : > { %1901 = vmatprep.mubr.msk.f32.mxu0 %vm439_vm3, %v400_v15  ;;  %v2211_v19 = vsel %vm397_vm2, %v401_v11, %v402_v14  ;;  %2029 = vmatprep.subr.msk.mxu1 %vm480_vm0, %v2182_v4  ;;  %v2230_v23 = vsel %vm397_vm2, %v402_v14, 0.0  ;;  %v407_v25 = vrot.slane %v2214_v20, 1  ;;  %v408_v26 = vrot.slane %v2217_v21, 1  ;;  %v2243_v27 = vld [vmem:[%s2177_s8 + $0x80] sm:$0xff]  ;;  %v2246_v28 = vld [vmem:[%s2177_s8 + $0x88] sm:$0xff]  ;;  %v1676_v6 = vld [vmem:[%s2177_s8 + $0x50] sm:$0xff] }
  0x17   : > { %1902 = vmatmul.mubr.msk.f32.vlgmr.msra.gmra.mrb[0].mxu0 %vm439_vm3, %v430_v16  ;;  %v2235_v24 = vsel %vm397_vm2, %v404_v17, %v405_v18  ;;  %v2255_v29 = vsel %vm397_vm2, %v405_v18, 0.0  ;;  %v410_v31 = vrot.slane %v2243_v27, 1  ;;  %v411_v32 = vrot.slane %v2246_v28, 1  ;;  %v2270_v33 = vld [vmem:[%s2177_s8 + $0xa0] sm:$0xff]  ;;  %v2273_v34 = vld [vmem:[%s2177_s8 + $0xa8] sm:$0xff]  ;;  %v1677_v8 = vld [vmem:[%s2177_s8 + $0x58] sm:$0xff] }
  0x18   : > { %1952 = vmatpush3.msra.mxu0 %v1721_v2  ;;  %1904 = vmatprep.mubr.msk.f32.mxu0 %vm439_vm3, %v2211_v19  ;;  %v2260_v30 = vsel %vm397_vm2, %v407_v25, %v408_v26  ;;  %v2280_v35 = vsel %vm397_vm2, %v408_v26, 0.0  ;;  %v2282_v36 = vld [vmem:[%s332_s16] sm:$0xff]  ;;  %v2284_v37 = vld [vmem:[%s332_s16 + $0x8] sm:$0xff]  ;;  %v413_v39 = vrot.slane %v2270_v33, 1  ;;  %v414_v40 = vrot.slane %v2273_v34, 1  ;;  %v1678_v16 = vld [vmem:[%s2177_s8 + $0x70] sm:$0xff] }
  0x19   : > { %1931 = vmatmul.mubr.msk.f32.gmra.mrb[2].mxu1 %vm621_vm1, %v2191_v10  ;;  %2003 = vmatprep.subr.mxu0 %v2222_v22  ;;  %v2289_v38 = vsel %vm397_vm2, %v410_v31, %v411_v32  ;;  %v2294_v41 = vld [vmem:[%s2177_s8 + $0xc0] sm:$0xff]  ;;  %v2299_v42 = vld [vmem:[%s2177_s8 + $0xc8] sm:$0xff]  ;;  %v1369_v43 = vrot.slane %v2282_v36, 1  ;;  %v1370_v44 = vrot.slane %v2284_v37, 1  ;;  %v2308_v45 = vsel %vm397_vm2, %v411_v32, 0.0  ;;  %v1679_v17 = vld [vmem:[%s2177_s8 + $0x78] sm:$0xff] }
  0x1a   : > { %1933 = vmatprep.mubr.msk.f32.mxu1 %vm621_vm1, %v2195_v12  ;;  %v416_v46 = vrot.slane %v2294_v41, 1  ;;  %v2314_v47 = vsel %vm397_vm2, %v413_v39, %v414_v40  ;;  %v417_v48 = vrot.slane %v2299_v42, 1  ;;  %v2326_v51 = vld [vmem:[%s2177_s8 + $0xe0] sm:$0xff]  ;;  %v2329_v52 = vld [vmem:[%s2177_s8 + $0xe8] sm:$0xff]  ;;  %v2336_v53 = vsel %vm397_vm2, %v414_v40, 0.0  ;;  %v1680_v32 = vld [vmem:[%s2177_s8 + $0x90] sm:$0xff] }
  0x1b   : > { %1905 = vmatmul.mubr.msk.f32.gmra.mrb[2].mxu0 %vm439_vm3, %v2230_v23  ;;  %v2318_v49 = vsel %vm397_vm2, %v1369_v43, %v1370_v44  ;;  %v2321_v50 = vsel %vm397_vm2, %v1370_v44, 0.0  ;;  %v419_v57 = vrot.slane %v2326_v51, 1  ;;  %v420_v58 = vrot.slane %v2329_v52, 1  ;;  %v1681_v39 = vld [vmem:[%s2177_s8 + $0x98] sm:$0xff] }
  0x1c   : > { %1907 = vmatprep.mubr.msk.f32.mxu0 %vm439_vm3, %v2235_v24  ;;  %v2343_v56 = vsel %vm397_vm2, %v416_v46, %v417_v48  ;;  %v2354_v61 = vsel %vm397_vm2, %v417_v48, 0.0  ;;  %v988_v1 = vsel %vm397_vm2, %v986_v59, %v987_v60  ;;  %v989_v2 = vrot.slane %v1674_v62, 1  ;;  %v1683_v46 = vld [vmem:[%s2177_s8 + $0xb8] sm:$0xff] }
  0x1d   : > { %1934 = vmatmul.mubr.msk.f32.gmra.mrb[4].mxu1 %vm621_vm1, %v2198_v13  ;;  %v2361_v0 = vsel %vm397_vm2, %v419_v57, %v420_v58  ;;  %v990_v3 = vrot.slane %v1675_v63, 1  ;;  %v2371_v5 = vsel %vm397_vm2, %v420_v58, 0.0  ;;  %v1018_v9 = vsel %vm397_vm2, %v987_v60, 0.0  ;;  %v1684_v58 = vld [vmem:[%s2177_s8 + $0xd0] sm:$0xff]  ;;  %v1685_v59 = vld [vmem:[%s2177_s8 + $0xd8] sm:$0xff] }
  0x1e   : > { %1936 = vmatprep.mubr.msk.f32.mxu1 %vm621_vm1, %v2214_v20  ;;  %v992_v14 = vrot.slane %v1676_v6, 1  ;;  %v993_v15 = vrot.slane %v1677_v8, 1  ;;  %v995_v26 = vrot.slane %v1678_v16, 1  ;;  %v996_v31 = vrot.slane %v1679_v17, 1 }
  0x1f   : > { %1908 = vmatmul.mubr.msk.f32.gmra.mrb[4].mxu0 %vm439_vm3, %v2255_v29  ;;  %v991_v11 = vsel %vm397_vm2, %v989_v2, %v990_v3  ;;  %v1019_v18 = vsel %vm397_vm2, %v990_v3, 0.0  ;;  %v998_v43 = vrot.slane %v1680_v32, 1  ;;  %v999_v44 = vrot.slane %v1681_v39, 1  ;;  %v1686_v2 = vld [vmem:[%s2177_s8 + $0xf0] sm:$0xff]  ;;  %v1687_v3 = vld [vmem:[%s2177_s8 + $0xf8] sm:$0xff] }
  0x20   : > { %1910 = vmatprep.mubr.msk.f32.mxu0 %vm439_vm3, %v2260_v30  ;;  %v994_v25 = vsel %vm397_vm2, %v992_v14, %v993_v15  ;;  %v997_v40 = vsel %vm397_vm2, %v995_v26, %v996_v31  ;;  %v1021_v48 = vsel %vm397_vm2, %v996_v31, 0.0  ;;  %v1002_v57 = vrot.slane %v1683_v46, 1 }
  0x21   : > { %1937 = vmatmul.mubr.msk.f32.gmra.mrb[6].mxu1 %vm621_vm1, %v2217_v21  ;;  %v1022_v60 = vsel %vm397_vm2, %v999_v44, 0.0 }
  0x22   : > { %1939 = vmatprep.mubr.msk.f32.mxu1 %vm621_vm1, %v2243_v27 }
  0x23   : > { %1911 = vmatmul.mubr.msk.f32.gmra.mrb[6].mxu0 %vm439_vm3, %v2280_v35 }
  0x24   : > { %1913 = vmatprep.mubr.msk.f32.mxu0 %vm439_vm3, %v2289_v38 }
  0x25   : > { %1940 = vmatmul.mubr.msk.f32.gmra.mrb[8].mxu1 %vm621_vm1, %v2246_v28 }
  0x26   : > { %1942 = vmatprep.mubr.msk.f32.mxu1 %vm621_vm1, %v2270_v33 }
  0x27   : > { %1914 = vmatmul.mubr.msk.f32.gmra.mrb[8].mxu0 %vm439_vm3, %v2308_v45 }
  0x28   : > { %1916 = vmatprep.mubr.msk.f32.mxu0 %vm439_vm3, %v2314_v47 }
  0x29   : > { %1943 = vmatmul.mubr.msk.f32.gmra.mrb[10].mxu1 %vm621_vm1, %v2273_v34 }
  0x2a   : > { %1945 = vmatprep.mubr.msk.f32.mxu1 %vm621_vm1, %v2294_v41 }
  0x2b   : > { %1917 = vmatmul.mubr.msk.f32.gmra.mrb[10].mxu0 %vm439_vm3, %v2336_v53 }
  0x2c   : > { %1919 = vmatprep.mubr.msk.f32.mxu0 %vm439_vm3, %v2343_v56 }
  0x2d   : > { %1946 = vmatmul.mubr.msk.f32.gmra.mrb[12].mxu1 %vm621_vm1, %v2299_v42 }
  0x2e   : > { %1948 = vmatprep.mubr.msk.f32.mxu1 %vm621_vm1, %v2326_v51 }
  0x2f   : > { %1920 = vmatmul.mubr.msk.f32.gmra.mrb[12].mxu0 %vm439_vm3, %v2354_v61 }
  0x30   : > { %1922 = vmatprep.mubr.msk.f32.mxu0 %vm439_vm3, %v2361_v0 }
  0x31   : > { %1949 = vmatmul.mubr.msk.f32.gmra.mrb[14].mxu1 %vm621_vm1, %v2329_v52 }
  0x32   : > { %1979 = vmatprep.mubr.msk.f32.mxu1 %vm439_vm3, %v988_v1  ;;  %v1005_v1 = vrot.slane %v1685_v59, 1 }
  0x33   : > { %1923 = vmatmul.mubr.msk.f32.gmra.mrb[14].mxu0 %vm439_vm3, %v2371_v5 }
  0x34   : > { %1953 = vmatprep.mubr.msk.f32.mxu0 %vm621_vm1, %v1672_v54  ;;  %v1000_v54 = vsel %vm397_vm2, %v998_v43, %v999_v44  ;;  %v1024_v14 = vsel %vm397_vm2, %v1005_v1, 0.0 }
  0x35   : > { %1980 = vmatmul.mubr.msk.f32.vlgmr.msra.gmra.mrb[16].mxu1 %vm439_vm3, %v1018_v9  ;;  %v1007_v9 = vrot.slane %v1686_v2, 1 }
  0x36   : > { %2030 = vmatpush3.msk.msra.mxu1 %vm480_vm0, %v2182_v4  ;;  %1982 = vmatprep.mubr.msk.f32.mxu1 %vm439_vm3, %v991_v11  ;;  %v1020_v4 = vsel %vm397_vm2, %v993_v15, 0.0  ;;  %v1008_v11 = vrot.slane %v1687_v3, 1 }
  0x37   : > { %1954 = vmatmul.mubr.msk.f32.vlgmr.msra.gmra.mrb[16].mxu0 %vm621_vm1, %v1673_v55 }
  0x38   : > { %2004 = vmatpush3.msra.mxu0 %v2222_v22  ;;  %1956 = vmatprep.mubr.msk.f32.mxu0 %vm621_vm1, %v1674_v62  ;;  %v1682_v22 = vld [vmem:[%s2177_s8 + $0xb0] sm:$0xff]  ;;  %v1009_v15 = vsel %vm397_vm2, %v1007_v9, %v1008_v11 }
  0x39   : > { %1983 = vmatmul.mubr.msk.f32.gmra.mrb[18].mxu1 %vm439_vm3, %v1019_v18  ;;  %v1001_v55 = vrot.slane %v1682_v22, 1 }
  0x3a   : > { %1985 = vmatprep.mubr.msk.f32.mxu1 %vm439_vm3, %v994_v25 }
  0x3b   : > { %1957 = vmatmul.mubr.msk.f32.gmra.mrb[18].mxu0 %vm621_vm1, %v1675_v63  ;;  %v1003_v62 = vsel %vm397_vm2, %v1001_v55, %v1002_v57  ;;  %v1004_v63 = vrot.slane %v1684_v58, 1 }
  0x3c   : > { %1959 = vmatprep.mubr.msk.f32.mxu0 %vm621_vm1, %v1676_v6  ;;  %v1023_v6 = vsel %vm397_vm2, %v1002_v57, 0.0 }
  0x3d   : > { %1986 = vmatmul.mubr.msk.f32.gmra.mrb[20].mxu1 %vm439_vm3, %v1020_v4 }
  0x3e   : > { %1988 = vmatprep.mubr.msk.f32.mxu1 %vm439_vm3, %v997_v40 }
  0x3f   : > { %1960 = vmatmul.mubr.msk.f32.gmra.mrb[20].mxu0 %vm621_vm1, %v1677_v8  ;;  %v1006_v8 = vsel %vm397_vm2, %v1004_v63, %v1005_v1 }
  0x40   : > { %1962 = vmatprep.mubr.msk.f32.mxu0 %vm621_vm1, %v1678_v16  ;;  %v1025_v16 = vsel %vm397_vm2, %v1008_v11, 0.0 }
  0x41   : > { %1989 = vmatmul.mubr.msk.f32.gmra.mrb[22].mxu1 %vm439_vm3, %v1021_v48 }
  0x42   : > { %1991 = vmatprep.mubr.msk.f32.mxu1 %vm439_vm3, %v1000_v54 }
  0x43   : > { %1963 = vmatmul.mubr.msk.f32.gmra.mrb[22].mxu0 %vm621_vm1, %v1679_v17 }
  0x44   : > { %1965 = vmatprep.mubr.msk.f32.mxu0 %vm621_vm1, %v1680_v32 }
  0x45   : > { %1992 = vmatmul.mubr.msk.f32.gmra.mrb[24].mxu1 %vm439_vm3, %v1022_v60 }
  0x46   : > { %1994 = vmatprep.mubr.msk.f32.mxu1 %vm439_vm3, %v1003_v62 }
  0x47   : > { %1966 = vmatmul.mubr.msk.f32.gmra.mrb[24].mxu0 %vm621_vm1, %v1681_v39 }
  0x48   : > { %1968 = vmatprep.mubr.msk.f32.mxu0 %vm621_vm1, %v1682_v22 }
  0x49   : > { %1995 = vmatmul.mubr.msk.f32.gmra.mrb[26].mxu1 %vm439_vm3, %v1023_v6 }
  0x4a   : > { %1997 = vmatprep.mubr.msk.f32.mxu1 %vm439_vm3, %v1006_v8 }
  0x4b   : > { %1969 = vmatmul.mubr.msk.f32.gmra.mrb[26].mxu0 %vm621_vm1, %v1683_v46 }
  0x4c   : > { %1971 = vmatprep.mubr.msk.f32.mxu0 %vm621_vm1, %v1684_v58 }
  0x4d   : > { %1998 = vmatmul.mubr.msk.f32.gmra.mrb[28].mxu1 %vm439_vm3, %v1024_v14 }
  0x4e   : > { %2000 = vmatprep.mubr.msk.f32.mxu1 %vm439_vm3, %v1009_v15 }
  0x4f   : > { %1972 = vmatmul.mubr.msk.f32.gmra.mrb[28].mxu0 %vm621_vm1, %v1685_v59 }
  0x50   : > { %1974 = vmatprep.mubr.msk.f32.mxu0 %vm621_vm1, %v1686_v2 }
  0x51   : > { %2001 = vmatmul.mubr.msk.f32.gmra.mrb[30].mxu1 %vm439_vm3, %v1025_v16 }
  0x52   : > { %2031 = vmatprep.mubr.msk.f32.mxu1 %vm439_vm3, %v2211_v19 }
  0x53   : > { %1975 = vmatmul.mubr.msk.f32.gmra.mrb[30].mxu0 %vm621_vm1, %v1687_v3 }
  0x54   : > { %2005 = vmatprep.mubr.msk.f32.mxu0 %vm621_vm1, %v2187_v7 }
  0x55   : > { %2032 = vmatmul.mubr.msk.f32.vlgmr.msra.gmra.mrb[32].mxu1 %vm439_vm3, %v2230_v23 }
  0x56   : > { %2034 = vmatprep.mubr.msk.f32.mxu1 %vm439_vm3, %v2235_v24 }
  0x57   : > { %2006 = vmatmul.mubr.msk.f32.vlgmr.msra.gmra.mrb[32].mxu0 %vm621_vm1, %v2191_v10 }
  0x58   : > { %2008 = vmatprep.mubr.msk.f32.mxu0 %vm621_vm1, %v2195_v12 }
  0x59   : > { %2035 = vmatmul.mubr.msk.f32.gmra.mrb[34].mxu1 %vm439_vm3, %v2255_v29 }
  0x5a   : > { %2037 = vmatprep.mubr.msk.f32.mxu1 %vm439_vm3, %v2260_v30 }
  0x5b   : > { %2009 = vmatmul.mubr.msk.f32.gmra.mrb[34].mxu0 %vm621_vm1, %v2198_v13 }
  0x5c   : > { %2011 = vmatprep.mubr.msk.f32.mxu0 %vm621_vm1, %v2214_v20 }
  0x5d   : > { %2038 = vmatmul.mubr.msk.f32.gmra.mrb[36].mxu1 %vm439_vm3, %v2280_v35 }
  0x5e   : > { %2040 = vmatprep.mubr.msk.f32.mxu1 %vm439_vm3, %v2289_v38 }
  0x5f   : > { %2012 = vmatmul.mubr.msk.f32.gmra.mrb[36].mxu0 %vm621_vm1, %v2217_v21 }
  0x60   : > { %2014 = vmatprep.mubr.msk.f32.mxu0 %vm621_vm1, %v2243_v27 }
  0x61   : > { %2041 = vmatmul.mubr.msk.f32.gmra.mrb[38].mxu1 %vm439_vm3, %v2308_v45 }
  0x62   : > { %2043 = vmatprep.mubr.msk.f32.mxu1 %vm439_vm3, %v2314_v47 }
  0x63   : > { %2015 = vmatmul.mubr.msk.f32.gmra.mrb[38].mxu0 %vm621_vm1, %v2246_v28 }
  0x64   : > { %2017 = vmatprep.mubr.msk.f32.mxu0 %vm621_vm1, %v2270_v33 }
  0x65   : > { %2044 = vmatmul.mubr.msk.f32.gmra.mrb[40].mxu1 %vm439_vm3, %v2336_v53 }
  0x66   : > { %2046 = vmatprep.mubr.msk.f32.mxu1 %vm439_vm3, %v2343_v56 }
  0x67   : > { %2018 = vmatmul.mubr.msk.f32.gmra.mrb[40].mxu0 %vm621_vm1, %v2273_v34 }
  0x68   : > { %2020 = vmatprep.mubr.msk.f32.mxu0 %vm621_vm1, %v2294_v41 }
  0x69   : > { %2047 = vmatmul.mubr.msk.f32.gmra.mrb[42].mxu1 %vm439_vm3, %v2354_v61 }
  0x6a   : > { %2049 = vmatprep.mubr.msk.f32.mxu1 %vm439_vm3, %v2361_v0 }
  0x6b   : > { %2021 = vmatmul.mubr.msk.f32.gmra.mrb[42].mxu0 %vm621_vm1, %v2299_v42 }
  0x6c   : > { %2023 = vmatprep.mubr.msk.f32.mxu0 %vm621_vm1, %v2326_v51 }
  0x6d   : > { %2050 = vmatmul.mubr.msk.f32.gmra.mrb[44].mxu1 %vm439_vm3, %v2371_v5 }
  0x6e   : > { %2052 = vmatprep.mubr.msk.f32.mxu1 %vm439_vm3, %v2318_v49 }
  0x6f   : > { %2024 = vmatmul.mubr.msk.f32.gmra.mrb[44].mxu0 %vm621_vm1, %v2329_v52 }
  0x70   : > { %2026 = vmatprep.mubr.msk.f32.mxu0 %vm621_vm1, %v2282_v36 }
  0x71   : > { %2053 = vmatmul.mubr.msk.f32.gmra.mrb[46].mxu1 %vm439_vm3, %v2321_v50 }
  0x73   : > { %2027 = vmatmul.mubr.msk.f32.gmra.mrb[46].mxu0 %vm621_vm1, %v2284_v37 }
  0xe7   : > { %v1929_v7 = vpop.f32.mrb[0].mxu1 }
  0xe8   : > { %v720_v10 = vpop.f32.mrb[1].mxu1 }
  0xea   : > { %v1903_v12 = vpop.f32.mrb[0].mxu0 }
  0xeb   : > { %v550_v13 = vpop.f32.mrb[1].mxu0 }
  0xec   : > { %v721_v19 = vadd.f32 %v720_v10, %v550_v13  ;;  %v1932_v20 = vpop.f32.mrb[2].mxu1 }
  0xed   : > { %v729_v21 = vpop.f32.mrb[3].mxu1 }
  0xee   : > { %v1906_v23 = vpop.f32.mrb[2].mxu0 }
  0xef   : > { %v559_v24 = vpop.f32.mrb[3].mxu0 }
  0xf0   : > { %v730_v27 = vadd.f32 %v729_v21, %v559_v24  ;;  %v1935_v28 = vpop.f32.mrb[4].mxu1 }
  0xf1   : > { %v738_v29 = vpop.f32.mrb[5].mxu1 }
  0xf2   : > { %v1909_v30 = vpop.f32.mrb[4].mxu0 }
  0xf3   : > { %v568_v33 = vpop.f32.mrb[5].mxu0 }
  0xf4   : > { %v739_v34 = vadd.f32 %v738_v29, %v568_v33  ;;  %v1938_v35 = vpop.f32.mrb[6].mxu1 }
  0xf5   : > { %v747_v36 = vpop.f32.mrb[7].mxu1 }
  0xf6   : > { %v1912_v38 = vpop.f32.mrb[6].mxu0 }
  0xf7   : > { %v577_v41 = vpop.f32.mrb[7].mxu0 }
  0xf8   : > { %v748_v37 = vadd.f32 %v747_v36, %v577_v41  ;;  %v1941_v42 = vpop.f32.mrb[8].mxu1 }
  0xf9   : > { %v756_v45 = vpop.f32.mrb[9].mxu1 }
  0xfa   : > { %v1915_v47 = vpop.f32.mrb[8].mxu0 }
  0xfb   : > { %v586_v49 = vpop.f32.mrb[9].mxu0 }
  0xfc   : > { %v757_v50 = vadd.f32 %v756_v45, %v586_v49  ;;  %v1944_v51 = vpop.f32.mrb[10].mxu1 }
  0xfd   : > { %v765_v52 = vpop.f32.mrb[11].mxu1 }
  0xfe   : > { %v1918_v53 = vpop.f32.mrb[10].mxu0 }
  0xff   : > { %v595_v56 = vpop.f32.mrb[11].mxu0 }
 0x100   : > { %v766_v61 = vadd.f32 %v765_v52, %v595_v56  ;;  %v1947_v0 = vpop.f32.mrb[12].mxu1 }
 0x101   : > { %v774_v5 = vpop.f32.mrb[13].mxu1  ;;  %v1791_v0 = vld [vmem:[%s2541_s4] ss:$0 sm:$0xff] }
 0x102   : > { %v1921_v17 = vpop.f32.mrb[12].mxu0 }
 0x103   : > { %v604_v18 = vpop.f32.mrb[13].mxu0 }
 0x104   : > { %v775_v25 = vadd.f32 %v774_v5, %v604_v18  ;;  %v1950_v26 = vpop.f32.mrb[14].mxu1 }
 0x105   : > { %v783_v31 = vpop.f32.mrb[15].mxu1 }
 0x106   : > { %v1924_v32 = vpop.f32.mrb[14].mxu0 }
 0x107   : > { %v613_v39 = vpop.f32.mrb[15].mxu0 }
 0x108   : > { %v784_v4 = vadd.f32 %v783_v31, %v613_v39  ;;  %v1981_v40 = vpop.f32.mrb[16].mxu1 }
 0x109   : > { %v1137_v43 = vpop.f32.mrb[17].mxu1 }
 0x10a   : > { %v1955_v44 = vpop.f32.mrb[16].mxu0 }
 0x10b   : > { %v907_v22 = vpop.f32.mrb[17].mxu0 }
 0x10c   : > { %v978_v46 = vadd.f32 %v907_v22, %v721_v19  ;;  %v1984_v48 = vpop.f32.mrb[18].mxu1 }
 0x10d   : > { %v1146_v54 = vpop.f32.mrb[19].mxu1 }
 0x10e   : > { %v1208_v55 = vadd.f32 %v1137_v43, %v978_v46  ;;  %v1958_v57 = vpop.f32.mrb[18].mxu0 }
 0x10f   : > { %v916_v58 = vpop.f32.mrb[19].mxu0 }
 0x110   : > { %v979_v59 = vadd.f32 %v916_v58, %v730_v27  ;;  %v1987_v60 = vpop.f32.mrb[20].mxu1 }
 0x111   : > { %v1155_v62 = vpop.f32.mrb[21].mxu1 }
 0x112   : > { %v1209_v63 = vadd.f32 %v1146_v54, %v979_v59  ;;  %v1961_v1 = vpop.f32.mrb[20].mxu0 }
 0x113   : > { %v925_v2 = vpop.f32.mrb[21].mxu0 }
 0x114   : > { %v980_v3 = vadd.f32 %v925_v2, %v739_v34  ;;  %v1990_v6 = vpop.f32.mrb[22].mxu1 }
 0x115   : > { %v1164_v8 = vpop.f32.mrb[23].mxu1 }
 0x116   : > { %v1210_v9 = vadd.f32 %v1155_v62, %v980_v3  ;;  %v1964_v11 = vpop.f32.mrb[22].mxu0 }
 0x117   : > { %v934_v14 = vpop.f32.mrb[23].mxu0 }
 0x118   : > { %v981_v15 = vadd.f32 %v934_v14, %v748_v37  ;;  %v1993_v16 = vpop.f32.mrb[24].mxu1 }
 0x119   : > { %v1173_v7 = vpop.f32.mrb[25].mxu1 }
 0x11a   : > { %v1211_v10 = vadd.f32 %v1164_v8, %v981_v15  ;;  %v1967_v12 = vpop.f32.mrb[24].mxu0 }
 0x11b   : > { %v943_v13 = vpop.f32.mrb[25].mxu0 }
 0x11c   : > { %v982_v19 = vadd.f32 %v943_v13, %v757_v50  ;;  %v1996_v20 = vpop.f32.mrb[26].mxu1 }
 0x11d   : > { %v1182_v21 = vpop.f32.mrb[27].mxu1 }
 0x11e   : > { %v1212_v23 = vadd.f32 %v1173_v7, %v982_v19  ;;  %v1970_v24 = vpop.f32.mrb[26].mxu0 }
 0x11f   : > { %v952_v27 = vpop.f32.mrb[27].mxu0 }
 0x120   : > { %v983_v28 = vadd.f32 %v952_v27, %v766_v61  ;;  %v1999_v29 = vpop.f32.mrb[28].mxu1 }
 0x121   : > { %v1191_v30 = vpop.f32.mrb[29].mxu1 }
 0x122   : > { %v1213_v33 = vadd.f32 %v1182_v21, %v983_v28  ;;  %v1973_v34 = vpop.f32.mrb[28].mxu0 }
 0x123   : > { %v961_v35 = vpop.f32.mrb[29].mxu0 }
 0x124   : > { %v984_v36 = vadd.f32 %v961_v35, %v775_v25  ;;  %v2002_v38 = vpop.f32.mrb[30].mxu1 }
 0x125   : > { %v1200_v41 = vpop.f32.mrb[31].mxu1 }
 0x126   : > { %v1214_v37 = vadd.f32 %v1191_v30, %v984_v36  ;;  %v1976_v42 = vpop.f32.mrb[30].mxu0 }
 0x127   : > { %v970_v45 = vpop.f32.mrb[31].mxu0 }
 0x128   : > { %v985_v47 = vadd.f32 %v970_v45, %v784_v4  ;;  %v2033_v49 = vpop.f32.mrb[32].mxu1 }
 0x129   : > { %v1450_v50 = vpop.f32.mrb[33].mxu1 }
 0x12a   : > { %v1215_v51 = vadd.f32 %v1200_v41, %v985_v47  ;;  %v2007_v52 = vpop.f32.mrb[32].mxu0 }
 0x12b   : > { %v1290_v53 = vpop.f32.mrb[33].mxu0 }
 0x12c   : > { %v1361_v56 = vadd.f32 %v1290_v53, %v1208_v55  ;;  %v2036_v61 = vpop.f32.mrb[34].mxu1 }
 0x12d   : > { %v1459_v5 = vpop.f32.mrb[35].mxu1 }
 0x12e   : > { %v1521_v17 = vadd.f32 %v1450_v50, %v1361_v56  ;;  %v2010_v18 = vpop.f32.mrb[34].mxu0 }
 0x12f   : > { %v1299_v25 = vpop.f32.mrb[35].mxu0 }
 0x130   : > { %v1536_v26 = vadd.f32 %v1791_v0, %v1521_v17  ;;  %v1362_v31 = vadd.f32 %v1299_v25, %v1209_v63  ;;  %v2039_v32 = vpop.f32.mrb[36].mxu1 }
 0x131   : > { %v1468_v39 = vpop.f32.mrb[37].mxu1 }
 0x132   : > { %1544 = vst.msk [vmem:[%s2510_s26] sm:$0xff] %vm439_vm3, %v1536_v26  ;;  %v1522_v4 = vadd.f32 %v1459_v5, %v1362_v31  ;;  %v2013_v40 = vpop.f32.mrb[36].mxu0 }
 0x133   : > { %v1308_v43 = vpop.f32.mrb[37].mxu0 }
 0x134   : > { %v1537_v44 = vadd.f32 %v1791_v0, %v1522_v4  ;;  %v1363_v22 = vadd.f32 %v1308_v43, %v1210_v9  ;;  %v2042_v46 = vpop.f32.mrb[38].mxu1 }
 0x135   : > { %v1477_v48 = vpop.f32.mrb[39].mxu1 }
 0x136   : > { %1545 = vst.msk [vmem:[%s2510_s26 + $0x8] sm:$0xff] %vm439_vm3, %v1537_v44  ;;  %v1523_v54 = vadd.f32 %v1468_v39, %v1363_v22  ;;  %v2016_v55 = vpop.f32.mrb[38].mxu0 }
 0x137   : > { %v1317_v57 = vpop.f32.mrb[39].mxu0 }
 0x138   : > { %v1538_v58 = vadd.f32 %v1791_v0, %v1523_v54  ;;  %v1364_v59 = vadd.f32 %v1317_v57, %v1211_v10  ;;  %v2045_v60 = vpop.f32.mrb[40].mxu1 }
 0x139   : > { %v1486_v62 = vpop.f32.mrb[41].mxu1 }
 0x13a   : > { %1546 = vst.msk [vmem:[%s2510_s26 + $0x10] sm:$0xff] %vm439_vm3, %v1538_v58  ;;  %v1524_v63 = vadd.f32 %v1477_v48, %v1364_v59  ;;  %v2019_v1 = vpop.f32.mrb[40].mxu0 }
 0x13b   : > { %v1326_v2 = vpop.f32.mrb[41].mxu0 }
 0x13c   : > { %v1539_v3 = vadd.f32 %v1791_v0, %v1524_v63  ;;  %v1365_v6 = vadd.f32 %v1326_v2, %v1212_v23  ;;  %v2048_v8 = vpop.f32.mrb[42].mxu1 }
 0x13d   : > { %v1495_v9 = vpop.f32.mrb[43].mxu1 }
 0x13e   : > { %1547 = vst.msk [vmem:[%s2510_s26 + $0x18] sm:$0xff] %vm439_vm3, %v1539_v3  ;;  %v1525_v11 = vadd.f32 %v1486_v62, %v1365_v6  ;;  %v2022_v14 = vpop.f32.mrb[42].mxu0 }
 0x13f   : > { %v1335_v15 = vpop.f32.mrb[43].mxu0 }
 0x140   : > { %v1540_v16 = vadd.f32 %v1791_v0, %v1525_v11  ;;  %v1366_v7 = vadd.f32 %v1335_v15, %v1213_v33  ;;  %v2051_v10 = vpop.f32.mrb[44].mxu1 }
 0x141   : > { %v1504_v12 = vpop.f32.mrb[45].mxu1 }
 0x142   : > { %1548 = vst.msk [vmem:[%s2510_s26 + $0x20] sm:$0xff] %vm439_vm3, %v1540_v16  ;;  %v1526_v13 = vadd.f32 %v1495_v9, %v1366_v7  ;;  %v2025_v19 = vpop.f32.mrb[44].mxu0 }
 0x143   : > { %v1344_v20 = vpop.f32.mrb[45].mxu0 }
 0x144   : > { %v1541_v21 = vadd.f32 %v1791_v0, %v1526_v13  ;;  %v1367_v23 = vadd.f32 %v1344_v20, %v1214_v37  ;;  %v2054_v24 = vpop.f32.mrb[46].mxu1 }
 0x145   : > { %v1513_v27 = vpop.f32.mrb[47].mxu1 }
 0x146   : > { %1549 = vst.msk [vmem:[%s2510_s26 + $0x28] sm:$0xff] %vm439_vm3, %v1541_v21  ;;  %v1527_v28 = vadd.f32 %v1504_v12, %v1367_v23  ;;  %v2028_v29 = vpop.f32.mrb[46].mxu0 }
 0x147   : > { %v1353_v30 = vpop.f32.mrb[47].mxu0 }
 0x148   : > { %v1542_v34 = vadd.f32 %v1791_v0, %v1527_v28  ;;  %v1368_v33 = vadd.f32 %v1353_v30, %v1215_v51 }
 0x14a   : > { %1550 = vst.msk [vmem:[%s2510_s26 + $0x30] sm:$0xff] %vm439_vm3, %v1542_v34  ;;  %v1528_v35 = vadd.f32 %v1513_v27, %v1368_v33 }
 0x14c   : > { %v1543_v36 = vadd.f32 %v1791_v0, %v1528_v35 }
 0x14e   : > { %1551 = vst.msk [vmem:[%s2510_s26 + $0x38] sm:$0xff] %vm439_vm3, %v1543_v36 }
 0x14f PF: > { %s15_s20 = sadd.s32 1, %s2104_s20   ;;  %s2543_s18 = smov %s2100_s19 }
 0x150   : > { %p12_p5 = scmp.ge.s32.totalorder %s15_s20, 4   ;;  %s2544_s19 = smov %s2546_s21 }
 0x152   :  { %14 = sbr.rel (!%p12_p5) target bundleno = 2 (0x2), region = 78 }

</bundles_post_ra>
